<compile_context>
chip_gen: v7x
topology: tpu7x:2x2x1
jax: 0.10.0
libtpu: 0.0.40
codegen_flags: <defaults>
</compile_context>

<pallas_src>
import functools

import jax
import jax.numpy as jnp
from jax.experimental import pallas as pl
from jax.experimental.pallas import tpu as pltpu


def _focal_loss_kernel(logits_ref, targets_ref, *rest, gamma, use_alpha,
                       n_total, mask_tail):
    if use_alpha:
        alpha_ref, out_ref = rest
    else:
        (out_ref,) = rest

    x = logits_ref[...].astype(jnp.float32)            # (T, C) f32
    t = targets_ref[...]                                # (T, 1) int32
    tn, c = x.shape

    # cross_entropy (reduction='none'):  ce_i = logsumexp(x_i) - x_i[t_i]
    m = jnp.max(x, axis=-1, keepdims=True)                              # (T,1)
    lse = m + jnp.log(jnp.sum(jnp.exp(x - m), axis=-1, keepdims=True))  # (T,1)

    # gather x_i[t_i] with a boolean mask + select (no f32 one-hot temporary)
    cls_ids = jax.lax.broadcasted_iota(jnp.int32, (tn, c), 1)           # (T,C)
    hit = cls_ids == t                                                  # (T,C)
    x_t = jnp.sum(jnp.where(hit, x, 0.0), axis=-1, keepdims=True)       # (T,1)

    ce = lse - x_t
    pt = jnp.exp(-ce)
    om = 1.0 - pt

    g = float(gamma)
    if g.is_integer() and 0 <= int(g) <= 8:
        gi = int(g)
        if gi == 0:
            mod = jnp.ones_like(ce)
        else:
            mod = om
            for _ in range(gi - 1):          # gamma=2 -> om*om, pure VPU
                mod = mod * om
    else:
        # float gamma: clamped pow via exp/log (avoids NaN if ce rounds < 0)
        om_c = jnp.maximum(om, 0.0)
        mod = jnp.exp(g * jnp.log(jnp.maximum(om_c, jnp.float32(1e-30))))
        mod = jnp.where(om_c == 0.0, 0.0, mod)

    loss = mod * ce                                                     # (T,1)

    if use_alpha:
        # in-kernel alpha gather from the resident (1, C) alpha row,
        # reusing the same class-hit mask (no (N,1) HBM operand).
        a_row = alpha_ref[...].astype(jnp.float32)                      # (1,C)
        a_t = jnp.sum(jnp.where(hit, a_row, 0.0), axis=-1, keepdims=True)
        loss = a_t * loss

    if mask_tail:
        # mask padded tail rows (only emitted when N % tile_n != 0).
        # NOTE: keep this a select; padded rows may hold NaN/Inf garbage.
        row_ids = (pl.program_id(0) * tn
                   + jax.lax.broadcasted_iota(jnp.int32, (tn, 1), 0))
        loss = jnp.where(row_ids < n_total, loss, 0.0)

    # per-block partial sum, broadcast into a lane-dense (1, 8, 128) block
    out_ref[...] = jnp.broadcast_to(jnp.sum(loss), out_ref.shape)


def _pick_tile_n(n, c, itemsize):
    """Row tile sized from a lane-padded VMEM byte budget.

    Accounts for the lane-padded logits row (roundup(C,128)*itemsize), the
    lane-padded (tile_n,1) int32 targets row (512 B), double buffering of both
    inputs, and ~3 lane-padded f32 rows of compute temporaries.  Budget keeps
    the footprint well under v7x's 64 MiB physical VMEM.
    """
    c_pad = ((c + 127) // 128) * 128
    per_row_in = 2 * (c_pad * itemsize + 128 * 4)   # double-buffered inputs
    per_row_tmp = 3 * c_pad * 4                     # f32 temporaries
    budget_bytes = 22 * 1024 * 1024
    t = budget_bytes // max(1, per_row_in + per_row_tmp)

    sub = max(8, 32 // max(1, itemsize))            # 8 f32 / 16 bf16 / 32 i8
    n_pad = ((n + sub - 1) // sub) * sub
    t = min(int(t), n_pad)
    t = max(sub, (t // sub) * sub)
    return t


def focal_loss(logits, targets, alpha=None, gamma=2.0, tile_n=None):
    """Pallas TPU focal loss.

    logits: (N, C) float (f32 or bf16), targets: (N,) int, alpha: (C,) or None.
    Returns the scalar mean focal loss (matches the PyTorch module forward).
    """
    n, c = logits.shape
    targets2d = targets.reshape(n, 1).astype(jnp.int32)
    use_alpha = alpha is not None
    itemsize = jnp.dtype(logits.dtype).itemsize

    if tile_n is None:
        tile_n = _pick_tile_n(n, c, itemsize)
    num_blocks = pl.cdiv(n, tile_n)
    mask_tail = (n % tile_n) != 0

    in_specs = [
        pl.BlockSpec((tile_n, c), lambda i: (i, 0)),   # logits (native dtype)
        pl.BlockSpec((tile_n, 1), lambda i: (i, 0)),   # targets
    ]
    args = [logits, targets2d]
    if use_alpha:
        alpha_row = jnp.asarray(alpha, dtype=jnp.float32).reshape(1, c)
        in_specs.append(pl.BlockSpec((1, c), lambda i: (0, 0)))  # resident
        args.append(alpha_row)

    kernel = functools.partial(_focal_loss_kernel, gamma=float(gamma),
                               use_alpha=use_alpha, n_total=n,
                               mask_tail=mask_tail)

    g = float(gamma)
    trans = n * c + (2 * n if g.is_integer() else 4 * n)
    bytes_acc = (n * c * itemsize + n * 4 + (c * 4 if use_alpha else 0)
                 + num_blocks * 8 * 128 * 4)
    cost = pl.CostEstimate(flops=6 * n * c, transcendentals=trans,
                           bytes_accessed=bytes_acc)

    partials = pl.pallas_call(
        kernel,
        out_shape=jax.ShapeDtypeStruct((num_blocks, 8, 128), jnp.float32),
        grid=(num_blocks,),
        in_specs=in_specs,
        # distinct lane-dense output block per step -> grid axis is parallel
        out_specs=pl.BlockSpec((1, 8, 128), lambda i: (i, 0, 0)),
        compiler_params=pltpu.CompilerParams(
            dimension_semantics=("parallel",),
            vmem_limit_bytes=28 * 1024 * 1024),
        cost_estimate=cost,
    )(*args)

    return jnp.sum(partials[:, 0, 0]) / jnp.float32(n)


def _focal_loss_ref(logits, targets, alpha=None, gamma=2.0):
    """Plain-JAX reference mirroring the PyTorch forward pass."""
    x = logits.astype(jnp.float32)
    lse = jax.nn.logsumexp(x, axis=-1)
    x_t = jnp.take_along_axis(x, targets[:, None], axis=-1)[:, 0]
    ce = lse - x_t
    pt = jnp.exp(-ce)
    loss = (1.0 - pt) ** gamma * ce
    if alpha is not None:
        loss = jnp.asarray(alpha, jnp.float32)[targets] * loss
    return jnp.mean(loss)


if __name__ == "__main__":
    key = jax.random.PRNGKey(0)
    k1, k2, k3, k4, k5, k6, k7 = jax.random.split(key, 7)

    # Test 1: module defaults (gamma=2) with per-class alpha, small shape.
    N, C = 8, 32
    logits = jax.random.normal(k1, (N, C), dtype=jnp.float32)
    targets = jax.random.randint(k2, (N,), 0, C, dtype=jnp.int32)
    alpha = jax.random.uniform(k3, (C,), dtype=jnp.float32,
                               minval=0.25, maxval=1.0)
    out = focal_loss(logits, targets, alpha=alpha, gamma=2.0)
    out = jax.block_until_ready(out)
    ref = _focal_loss_ref(logits, targets, alpha=alpha, gamma=2.0)
    assert jnp.allclose(out, ref, rtol=1e-5, atol=1e-6), (out, ref)

    # Test 2: alpha=None, ragged N (multi-block parallel partials + tail mask).
    N2, C2 = 20, 32
    logits2 = jax.random.normal(k4, (N2, C2), dtype=jnp.float32)
    targets2 = jax.random.randint(k5, (N2,), 0, C2, dtype=jnp.int32)
    out2 = focal_loss(logits2, targets2, alpha=None, gamma=2.0, tile_n=8)
    out2 = jax.block_until_ready(out2)
    ref2 = _focal_loss_ref(logits2, targets2, alpha=None, gamma=2.0)
    assert jnp.allclose(out2, ref2, rtol=1e-5, atol=1e-6), (out2, ref2)

    # Test 3: bf16 logits with alpha, ragged N, bf16-aligned row tile.
    N3, C3 = 24, 32
    logits3 = jax.random.normal(k6, (N3, C3), dtype=jnp.float32
                                ).astype(jnp.bfloat16)
    targets3 = jax.random.randint(k7, (N3,), 0, C3, dtype=jnp.int32)
    out3 = focal_loss(logits3, targets3, alpha=alpha, gamma=2.0, tile_n=16)
    out3 = jax.block_until_ready(out3)
    ref3 = _focal_loss_ref(logits3, targets3, alpha=alpha, gamma=2.0)
    assert jnp.allclose(out3, ref3, rtol=1e-5, atol=1e-6), (out3, ref3)

    print("KERNEL_OK")
</pallas_src>

<mosaic_0001>
module attributes {stable_mosaic.version = 11 : i64} {
  func.func @_focal_loss_kernel(%arg0: i32, %arg1: memref<8x32xf32, #tpu.memory_space<vmem>>, %arg2: memref<8x1xi32, #tpu.memory_space<vmem>>, %arg3: memref<1x32xf32, #tpu.memory_space<vmem>>, %arg4: memref<1x8x128xf32, #tpu.memory_space<vmem>>) attributes {dimension_semantics = [#tpu.dimension_semantics<parallel>], iteration_bounds = array<i64: 1>, scalar_prefetch = 0 : i64, scratch_operands = 0 : i64, tpu.core_type = #tpu.core_type<tc>, window_params = [{transform_indices = @transform_0, window_bounds = array<i64: 8, 32>}, {transform_indices = @transform_1, window_bounds = array<i64: 8, 1>}, {pipeline_mode = #tpu.pipeline_mode<synchronous>, transform_indices = @transform_2, window_bounds = array<i64: 1, 32>}, {transform_indices = @transform_3, window_bounds = array<i64: 1, 8, 128>}]} {
    %c0 = arith.constant 0 : index
    %c0_0 = arith.constant 0 : index
    %0 = vector.load %arg1[%c0, %c0_0] : memref<8x32xf32, #tpu.memory_space<vmem>>, vector<8x32xf32>
    %c0_1 = arith.constant 0 : index
    %c0_2 = arith.constant 0 : index
    %1 = vector.load %arg2[%c0_1, %c0_2] : memref<8x1xi32, #tpu.memory_space<vmem>>, vector<8x1xi32>
    %cst = arith.constant dense<0xFF800000> : vector<8xf32>
    %2 = vector.multi_reduction <maximumf>, %0, %cst [1] : vector<8x32xf32> to vector<8xf32>
    %3 = vector.shape_cast %2 : vector<8xf32> to vector<8x1xf32>
    %4 = vector.broadcast %3 : vector<8x1xf32> to vector<8x32xf32>
    %5 = arith.subf %0, %4 : vector<8x32xf32>
    %6 = math.exp %5 : vector<8x32xf32>
    %cst_3 = arith.constant dense<0.000000e+00> : vector<8xf32>
    %7 = vector.multi_reduction <add>, %6, %cst_3 [1] : vector<8x32xf32> to vector<8xf32>
    %8 = vector.shape_cast %7 : vector<8xf32> to vector<8x1xf32>
    %9 = math.log %8 : vector<8x1xf32>
    %10 = arith.addf %3, %9 : vector<8x1xf32>
    %11 = tpu.iota {dimensions = array<i32: 1>} : vector<8x32xi32>
    %12 = vector.broadcast %1 : vector<8x1xi32> to vector<8x32xi32>
    %13 = arith.cmpi eq, %11, %12 : vector<8x32xi32>
    %cst_4 = arith.constant 0.000000e+00 : f32
    %14 = vector.broadcast %cst_4 : f32 to vector<8x32xf32>
    %15 = arith.select %13, %0, %14 : vector<8x32xi1>, vector<8x32xf32>
    %cst_5 = arith.constant dense<0.000000e+00> : vector<8xf32>
    %16 = vector.multi_reduction <add>, %15, %cst_5 [1] : vector<8x32xf32> to vector<8xf32>
    %17 = vector.shape_cast %16 : vector<8xf32> to vector<8x1xf32>
    %18 = arith.subf %10, %17 : vector<8x1xf32>
    %cst_6 = arith.constant 0.000000e+00 : f32
    %19 = vector.broadcast %cst_6 : f32 to vector<8x1xf32>
    %20 = arith.subf %19, %18 : vector<8x1xf32>
    %21 = math.exp %20 : vector<8x1xf32>
    %cst_7 = arith.constant 1.000000e+00 : f32
    %22 = vector.broadcast %cst_7 : f32 to vector<8x1xf32>
    %23 = arith.subf %22, %21 : vector<8x1xf32>
    %24 = arith.mulf %23, %23 : vector<8x1xf32>
    %25 = arith.mulf %24, %18 : vector<8x1xf32>
    %c0_8 = arith.constant 0 : index
    %c0_9 = arith.constant 0 : index
    %26 = vector.load %arg3[%c0_8, %c0_9] : memref<1x32xf32, #tpu.memory_space<vmem>>, vector<1x32xf32>
    %cst_10 = arith.constant 0.000000e+00 : f32
    %27 = vector.shape_cast %26 : vector<1x32xf32> to vector<1x32xf32>
    %28 = vector.broadcast %27 : vector<1x32xf32> to vector<8x32xf32>
    %29 = vector.broadcast %cst_10 : f32 to vector<8x32xf32>
    %30 = arith.select %13, %28, %29 : vector<8x32xi1>, vector<8x32xf32>
    %cst_11 = arith.constant dense<0.000000e+00> : vector<8xf32>
    %31 = vector.multi_reduction <add>, %30, %cst_11 [1] : vector<8x32xf32> to vector<8xf32>
    %32 = vector.shape_cast %31 : vector<8xf32> to vector<8x1xf32>
    %33 = arith.mulf %32, %25 : vector<8x1xf32>
    %34 = vector.shape_cast %33 : vector<8x1xf32> to vector<1x8x1xf32>
    %cst_12 = arith.constant dense<0.000000e+00> : vector<1xf32>
    %35 = vector.multi_reduction <add>, %34, %cst_12 [1, 2] : vector<1x8x1xf32> to vector<1xf32>
    %36 = vector.shape_cast %35 : vector<1xf32> to vector<1x1x1xf32>
    %37 = vector.extract %36[0, 0, 0] : f32 from vector<1x1x1xf32>
    %38 = vector.broadcast %37 : f32 to vector<1x8x128xf32>
    %c0_13 = arith.constant 0 : index
    %c0_14 = arith.constant 0 : index
    %c0_15 = arith.constant 0 : index
    %39 = vector.load %arg4[%c0_13, %c0_14, %c0_15] : memref<1x8x128xf32, #tpu.memory_space<vmem>>, vector<1x8x128xf32>
    tpu.vector_store %arg4[%c0_13, %c0_14, %c0_15], %38 {strides = array<i32>} : memref<1x8x128xf32, #tpu.memory_space<vmem>>, vector<1x8x128xf32>,
    return
  }
  func.func @transform_0(%arg0: i32) -> (i32, i32) {
    %c0_i32 = arith.constant 0 : i32
    %c0_i32_0 = arith.constant 0 : i32
    return %arg0, %c0_i32 : i32, i32
  }
  func.func @transform_1(%arg0: i32) -> (i32, i32) {
    %c0_i32 = arith.constant 0 : i32
    %c0_i32_0 = arith.constant 0 : i32
    return %arg0, %c0_i32 : i32, i32
  }
  func.func @transform_2(%arg0: i32) -> (i32, i32) {
    %c0_i32 = arith.constant 0 : i32
    %c0_i32_0 = arith.constant 0 : i32
    %c0_i32_1 = arith.constant 0 : i32
    return %c0_i32, %c0_i32_0 : i32, i32
  }
  func.func @transform_3(%arg0: i32) -> (i32, i32, i32) {
    %c0_i32 = arith.constant 0 : i32
    %c0_i32_0 = arith.constant 0 : i32
    %c0_i32_1 = arith.constant 0 : i32
    return %arg0, %c0_i32, %c0_i32_0 : i32, i32, i32
  }
}

</mosaic_0001>

<bundles_post_ra>
// kernel: tpu_custom_call.1
= control target key start
LH: loop header
LB: loop body
LE: loop exit
PB: predicated region body
PF: predicated region fallthrough
CT: control target
= control target key end

     0   :  { %vm17_vm0 = vcmask 261120   ;;  %s169_s0 = inlined_call_operand.vmem [shape: f32[8,32], index: 0, kind: input, shape index: {}]   ;;  %s170_s1 = inlined_call_operand.vmem [shape: s32[8,1], index: 1, kind: input, shape index: {}]   ;;  %s171_s2 = inlined_call_operand.vmem [shape: f32[1,32], index: 2, kind: input, shape index: {}]   ;;  %s172_s3 = inlined_call_operand.hbm [shape: f32[1,8,128], index: 3, kind: output, shape index: {}]  }
   0x1   :  { %v15_v0 = vld [vmem:[%s169_s0] sm:$0xff] }
   0x2   :  { %8 = vsyncpa [#allocation3], 0  ;;  %v18_v1 = vsel %vm17_vm0, %v15_v0, -inf  ;;  %v122_v2 = vmov 0   ;;  %v16_v3 = vld [vmem:[%s170_s1] sm:$0xff]  ;;  %v30_v7 = vlaneseq  ;;  %vm59_vm2 = vcmask 7168  }
   0x3   :  { %91 = vset.pattern.permute.xlu0 %v122_v2  ;;  %v86_v13 = vld [vmem:[%s171_s2] ss:$0 sm:$0xff]  ;;  %s123_s1 = smov [#allocation2]  }
   0x4   :  { %19 = vmax.xlane.f32.xlu0 %v18_v1  ;;  %v31_v8 = vand.u32 127, %v30_v7  ;;  %s78_s2 = sshll.u32 %s123_s1, 4  ;;  %s79_s2 = int_to_ptr.vmem [resolvable:$true] %s78_s2 }
   0x5   :  { %s98_s18 = scalar_lea.vmem %s79_s2, 128  ;;  %p103_p1 = scmp.lt.s32.totalorder %s79_s2, %s79_s2 }
   0x6   :  { %p99_p0 = scmp.ne.s32.totalorder %s79_s2, %s98_s18  ;;  %p104_p2 = scmp.lt.s32.totalorder %s98_s18, %s98_s18 }
   0x8   :  { %p105_p3 = por %p104_p2, %p103_p1 }
   0xa   :  { %p106_p4 = pnand %p105_p3, %p99_p0 }
  0x1a   :  { %33 = vperm.xlu0 %91, %v16_v3  }
  0x91   :  { %v20_v4 = vpop.xlane.xlu0 %19 }
  0x92   :  { %v21_v5 = vsub.f32 %v15_v0, %v20_v4 }
  0x94   :  { %v22_v6 = vmul.f32 1.442695, %v21_v5 }
  0x96   :  { %92 = vpow2.f32 %v22_v6 }
  0x99   :  { %v34_v9 = vpop.permute.xlu0 %33 }
  0x9a   :  { %vm35_vm1 = vcmp.eq.s32.totalorder %v31_v8, %v34_v9 }
  0x9b   :  { %v36_v11 = vsel %vm35_vm1, %v15_v0, 0.0  ;;  %v54_v15 = vsel %vm35_vm1, %v86_v13, 0.0 }
  0x9c   :  { %v37_v14 = vsel %vm17_vm0, %v36_v11, 0.0  ;;  %v55_v16 = vsel %vm17_vm0, %v54_v15, 0.0 }
  0xa0   :  { %v93_v10 = vpop.eup %92 }
  0xa1   :  { %v24_v12 = vsel %vm17_vm0, %v93_v10, 0.0 }
  0xa2   :  { %25 = vadd.xlane.f32.xlu1 %v24_v12 }
  0xa6   :  { %38 = vadd.xlane.f32.xlu1 %v37_v14 }
  0xaa   :  { %56 = vadd.xlane.f32.xlu1 %v55_v16 }
 0x12f   :  { %v26_v17 = vpop.xlane.xlu1 %25 }
 0x130   :  { %94 = vlog2.f32 %v26_v17 }
 0x133   :  { %v39_v21 = vpop.xlane.xlu1 %38 }
 0x137   :  { %v57_v29 = vpop.xlane.xlu1 %56 }
 0x13a   :  { %v95_v18 = vpop.eup %94 }
 0x13b   :  { %v28_v19 = vmul.f32 0.6931472, %v95_v18 }
 0x13d   :  { %v29_v20 = vadd.f32 %v28_v19, %v20_v4 }
 0x13f   :  { %v40_v22 = vsub.f32 %v29_v20, %v39_v21 }
 0x141   :  { %v41_v23 = vsub.f32 0.0, %v40_v22 }
 0x143   :  { %v42_v24 = vmul.f32 1.442695, %v41_v23 }
 0x145   :  { %96 = vpow2.f32 %v42_v24 }
 0x14f   :  { %v97_v25 = vpop.eup %96 }
 0x150   :  { %v44_v26 = vsub.f32 1.0, %v97_v25 }
 0x152   :  { %v45_v27 = vmul.f32 %v44_v26, %v44_v26 }
 0x154   :  { %v46_v28 = vmul.f32 %v45_v27, %v40_v22 }
 0x156   :  { %v58_v30 = vmul.f32 %v57_v29, %v46_v28 }
 0x158   :  { %v60_v31 = vsel %vm59_vm2, %v58_v30, 0.0 }
 0x159   :  { %61 = vadd.xlane.f32.xlu1 %v60_v31 }
 0x1e6   :  { %v62_v32 = vpop.xlane.xlu1 %61 }
 0x1e7   :  { %v63_v33 = vrot.slane %v62_v32, 4 }
 0x1e9   :  { %v64_v34 = vadd.f32 %v63_v33, %v62_v32 }
 0x1eb   :  { %v65_v35 = vrot.slane %v64_v34, 2 }
 0x1ed   :  { %v66_v36 = vadd.f32 %v65_v35, %v64_v34 }
 0x1ef   :  { %v67_v37 = vrot.slane %v66_v36, 1 }
 0x1f1   :  { %v68_v38 = vadd.f32 %v67_v37, %v66_v36 }
 0x1f3   :  { %87 = vpush %v68_v38 }
 0x224   :  { %s88_s17 = spop %87 }
 0x225   :  { %v70_v39 = vstv %s88_s17 }
 0x226   :  { %71 = vst [vmem:[#allocation2] sm:$0xff] %v70_v39 }
 0x227   :  { %109 = shalt.err (!%p106_p4)
}
 0x228   :  { %s110_s21 = scalar_lea.hbm %s172_s3, 128 }
 0x229   :  { %p111_p5 = scmp.ne.s32.totalorder %s172_s3, %s110_s21  ;;  %p114_p6 = scmp.lt.u32.totalorder %s110_s21, %s172_s3 }
 0x22b   :  { %p116_p7 = pnand %p114_p6, %p111_p5 }
 0x22d   :  { %119 = shalt.err (!%p116_p7)
}
 0x22e   :  { %81 = dma.vmem_to_hbm [thread:$0]  %s79_s2, 128, %s172_s3, [#allocation3]  }
 0x22f   :  { %120 = dma.done.wait [#allocation3], 128  }
 0x230   :  { %121 = vsyncadd [#allocation3], 4294967168 }
 0x231   :  { %85 = vsyncpa [#allocation3], 1 }

</bundles_post_ra>
